<compile_context>
chip_gen: v6e
topology: v6e:2x2x1
jax: 0.10.0
libtpu: 0.0.40
codegen_flags: <defaults>
</compile_context>

<pallas_src>
import math
import jax
import jax.numpy as jnp
from jax.experimental import pallas as pl
from jax.experimental.pallas import tpu as pltpu


def _round_up(x, m):
    return (x + m - 1) // m * m


def _vmem_capacity_bytes():
    # Per-TensorCore VMEM capacity; fall back to v7x's 64 MiB (the smallest).
    try:
        return int(pltpu.get_tpu_info().vmem_capacity_bytes)
    except Exception:
        return 64 * 1024 * 1024


# ---------------------------------------------------------------------------
# Kernel 1: support = x @ W_t + b       (W_t is pre-transposed: (F_in, F_out))
# ---------------------------------------------------------------------------
def _linear_kernel(x_ref, wt_ref, b_ref, o_ref):
    acc = jnp.dot(x_ref[...], wt_ref[...], preferred_element_type=jnp.float32)
    acc = acc + b_ref[...].astype(jnp.float32)   # bias epilogue in f32
    o_ref[...] = acc.astype(o_ref.dtype)


# ---------------------------------------------------------------------------
# Kernel 2a: out = A @ support, support fully VMEM-resident (constant block
#            index -> DMA'd once), only A row tiles streamed from HBM.
# ---------------------------------------------------------------------------
def _aggregate_resident_kernel(a_ref, s_ref, o_ref):
    o_ref[...] = jnp.dot(
        a_ref[...], s_ref[...], preferred_element_type=jnp.float32
    ).astype(o_ref.dtype)


# ---------------------------------------------------------------------------
# Kernel 2b: k-tiled reduction, f32 output -> accumulate directly into o_ref
#            (its block index is constant over k, so it stays in VMEM).
# ---------------------------------------------------------------------------
def _aggregate_ktiled_f32out_kernel(a_ref, s_ref, o_ref):
    @pl.when(pl.program_id(1) == 0)
    def _():
        o_ref[...] = jnp.zeros_like(o_ref)

    o_ref[...] += jnp.dot(
        a_ref[...], s_ref[...], preferred_element_type=jnp.float32
    )


# ---------------------------------------------------------------------------
# Kernel 2c: k-tiled reduction, non-f32 output -> f32 VMEM accumulator.
# ---------------------------------------------------------------------------
def _aggregate_ktiled_kernel(a_ref, s_ref, o_ref, acc_ref):
    @pl.when(pl.program_id(1) == 0)
    def _():
        acc_ref[...] = jnp.zeros_like(acc_ref)

    acc_ref[...] += jnp.dot(
        a_ref[...], s_ref[...], preferred_element_type=jnp.float32
    )

    @pl.when(pl.program_id(1) == pl.num_programs(1) - 1)
    def _():
        o_ref[...] = acc_ref[...].astype(o_ref.dtype)


def gcn_layer_forward(
    adj, x, w, b, *, tile_m=512, tile_k=512, agg_dtype=None, prefer_resident=True
):
    """out = adj @ (x @ w.T + b).

    agg_dtype: optional dtype (e.g. jnp.bfloat16) used for adjacency/support in
    the aggregation matmul (f32 accumulation).  None -> keep input dtype.
    """
    N, f_in = x.shape
    f_out, f_in_w = w.shape
    assert f_in_w == f_in
    assert adj.shape == (N, N)
    assert tile_m % 128 == 0 and tile_k % 128 == 0

    out_dtype = x.dtype
    support_dtype = agg_dtype if agg_dtype is not None else x.dtype
    capacity = _vmem_capacity_bytes()
    vmem_limit = int(capacity * 3 // 4)

    # ---- tile selection + zero padding to tile multiples -------------------
    n_pad0 = _round_up(N, 128)
    tile_m = min(tile_m, n_pad0)
    tile_k = min(tile_k, n_pad0)
    # keep >= 2 row tiles when possible so v7x megacore gets both TCs busy
    if n_pad0 >= 256 and n_pad0 // tile_m < 2:
        tile_m = max(128, (n_pad0 // 2) // 128 * 128)
    n_pad = _round_up(N, math.lcm(tile_m, tile_k))

    if n_pad != N:
        pad = n_pad - N
        # zero adjacency cols nullify the (b-valued) padded support rows
        adj = jnp.pad(adj, ((0, pad), (0, pad)))
        x = jnp.pad(x, ((0, pad), (0, 0)))

    w_t = w.T                      # one-time transpose outside the kernel
    b2 = b.reshape(1, f_out)

    # ---- support = x @ W^T + b  (fat row tile, computed once) --------------
    x_isz = jnp.dtype(x.dtype).itemsize
    s_isz = jnp.dtype(support_dtype).itemsize
    lin_budget = capacity // 4
    tile_lin = 128
    for cand in (4096, 2048, 1024, 512, 256, 128):
        if n_pad % cand != 0:
            continue
        foot = (
            cand * f_in * x_isz * 2          # x tile, double-buffered
            + cand * f_out * s_isz * 2       # out tile, double-buffered
            + f_in * f_out * jnp.dtype(w_t.dtype).itemsize
            + f_out * jnp.dtype(b2.dtype).itemsize
        )
        if foot <= lin_budget:
            tile_lin = cand
            break

    support = pl.pallas_call(
        _linear_kernel,
        out_shape=jax.ShapeDtypeStruct((n_pad, f_out), support_dtype),
        grid_spec=pltpu.PrefetchScalarGridSpec(
            num_scalar_prefetch=0,
            grid=(n_pad // tile_lin,),
            in_specs=[
                pl.BlockSpec((tile_lin, f_in), lambda i: (i, 0)),
                pl.BlockSpec((f_in, f_out), lambda i: (0, 0)),
                pl.BlockSpec((1, f_out), lambda i: (0, 0)),
            ],
            out_specs=pl.BlockSpec((tile_lin, f_out), lambda i: (i, 0)),
        ),
        compiler_params=pltpu.CompilerParams(
            dimension_semantics=("parallel",),
            vmem_limit_bytes=vmem_limit,
        ),
    )(x, w_t, b2)

    adj_a = adj.astype(support_dtype) if agg_dtype is not None else adj
    a_isz = jnp.dtype(adj_a.dtype).itemsize
    o_isz = jnp.dtype(out_dtype).itemsize

    # ---- aggregation: resident-support path if it fits VMEM ----------------
    resident_bytes = (
        n_pad * f_out * s_isz * 2          # support slab (assume 2 buffers)
        + tile_m * n_pad * a_isz * 2       # A row tile, double-buffered
        + tile_m * f_out * o_isz * 2       # out tile, double-buffered
    )
    use_resident = prefer_resident and resident_bytes <= int(0.45 * capacity)

    if use_resident:
        out = pl.pallas_call(
            _aggregate_resident_kernel,
            out_shape=jax.ShapeDtypeStruct((n_pad, f_out), out_dtype),
            grid_spec=pltpu.PrefetchScalarGridSpec(
                num_scalar_prefetch=0,
                grid=(n_pad // tile_m,),
                in_specs=[
                    pl.BlockSpec((tile_m, n_pad), lambda i: (i, 0)),
                    # constant block index -> support DMA'd once, stays in VMEM
                    pl.BlockSpec((n_pad, f_out), lambda i: (0, 0)),
                ],
                out_specs=pl.BlockSpec((tile_m, f_out), lambda i: (i, 0)),
            ),
            compiler_params=pltpu.CompilerParams(
                dimension_semantics=("parallel",),
                vmem_limit_bytes=vmem_limit,
            ),
        )(adj_a, support)
    else:
        if out_dtype == jnp.float32:
            kernel = _aggregate_ktiled_f32out_kernel
            scratch = []
        else:
            kernel = _aggregate_ktiled_kernel
            scratch = [pltpu.VMEM((tile_m, f_out), jnp.float32)]
        out = pl.pallas_call(
            kernel,
            out_shape=jax.ShapeDtypeStruct((n_pad, f_out), out_dtype),
            grid_spec=pltpu.PrefetchScalarGridSpec(
                num_scalar_prefetch=0,
                grid=(n_pad // tile_m, n_pad // tile_k),
                in_specs=[
                    pl.BlockSpec((tile_m, tile_k), lambda i, k: (i, k)),
                    pl.BlockSpec((tile_k, f_out), lambda i, k: (k, 0)),
                ],
                out_specs=pl.BlockSpec((tile_m, f_out), lambda i, k: (i, 0)),
                scratch_shapes=scratch,
            ),
            compiler_params=pltpu.CompilerParams(
                dimension_semantics=("parallel", "arbitrary"),
                vmem_limit_bytes=vmem_limit,
            ),
        )(adj_a, support)

    return out[:N] if n_pad != N else out


def build_normalized_adjacency(key, n):
    # random symmetric graph + self loops, then D^-1/2 (A+I) D^-1/2
    raw = jax.random.bernoulli(key, p=0.1, shape=(n, n)).astype(jnp.float32)
    adj = jnp.maximum(raw, raw.T)
    adj = jnp.maximum(adj, jnp.eye(n, dtype=jnp.float32))
    deg = adj.sum(axis=1)
    d_inv_sqrt = 1.0 / jnp.sqrt(deg)
    return adj * d_inv_sqrt[:, None] * d_inv_sqrt[None, :]


def _make_inputs(key, n, f_in, f_out):
    k_adj, k_x, k_w, k_b = jax.random.split(key, 4)
    adj = build_normalized_adjacency(k_adj, n)
    x = jax.random.normal(k_x, (n, f_in), dtype=jnp.float32)
    # deterministic parameter init, mirroring GCNLayer.reset_parameters:
    stdv = 1.0 / math.sqrt(f_out)
    w = jax.random.uniform(k_w, (f_out, f_in), jnp.float32, -stdv, stdv)
    b = jax.random.uniform(k_b, (f_out,), jnp.float32, -stdv, stdv)
    return adj, x, w, b


if __name__ == "__main__":
    N, F_IN, F_OUT = 256, 128, 128
    key = jax.random.PRNGKey(0)
    adj, x, w, b = _make_inputs(key, N, F_IN, F_OUT)
    ref = adj @ (x @ w.T + b)

    # 1) f32, resident-support path (default).
    out = jax.block_until_ready(gcn_layer_forward(adj, x, w, b))
    assert out.shape == (N, F_OUT)
    assert jnp.allclose(out, ref, atol=1e-4, rtol=1e-4), "f32 resident mismatch"

    # 2) f32, forced k-tiled path (tiny tile_k only to exercise the reduction
    #    + direct-o_ref accumulation on this small graph; production >= 512).
    out_kt = jax.block_until_ready(
        gcn_layer_forward(adj, x, w, b, tile_m=128, tile_k=128, prefer_resident=False)
    )
    assert jnp.allclose(out_kt, ref, atol=1e-4, rtol=1e-4), "f32 k-tiled mismatch"

    # 3) f32 inputs, bf16 adjacency/support in the aggregation (f32 accumulate).
    out_agg16 = jax.block_until_ready(
        gcn_layer_forward(adj, x, w, b, agg_dtype=jnp.bfloat16)
    )
    assert jnp.max(jnp.abs(out_agg16 - ref)) < 1e-1, "bf16-agg mismatch"

    # 4) bf16 end-to-end, k-tiled fallback (exercises the f32 scratch epilogue).
    out_bf16 = jax.block_until_ready(
        gcn_layer_forward(
            adj.astype(jnp.bfloat16), x.astype(jnp.bfloat16),
            w.astype(jnp.bfloat16), b.astype(jnp.bfloat16),
            tile_m=128, tile_k=128, prefer_resident=False,
        )
    )
    assert jnp.max(jnp.abs(out_bf16.astype(jnp.float32) - ref)) < 1e-1, "bf16 mismatch"

    # 5) non-tile-multiple N (exercises zero-padding + output slice).
    N2 = 200
    adj2, x2, w2, b2 = _make_inputs(jax.random.PRNGKey(1), N2, F_IN, F_OUT)
    ref2 = adj2 @ (x2 @ w2.T + b2)
    out2 = jax.block_until_ready(gcn_layer_forward(adj2, x2, w2, b2))
    assert out2.shape == (N2, F_OUT)
    assert jnp.allclose(out2, ref2, atol=1e-4, rtol=1e-4), "padded-N mismatch"

    print("KERNEL_OK")
</pallas_src>

<mosaic_0001>
module attributes {stable_mosaic.version = 11 : i64} {
  func.func @_linear_kernel(%arg0: i32, %arg1: memref<256x128xf32, #tpu.memory_space<vmem>>, %arg2: memref<128x128xf32, #tpu.memory_space<vmem>>, %arg3: memref<1x128xf32, #tpu.memory_space<vmem>>, %arg4: memref<256x128xf32, #tpu.memory_space<vmem>>) attributes {dimension_semantics = [#tpu.dimension_semantics<parallel>], iteration_bounds = array<i64: 1>, scalar_prefetch = 0 : i64, scratch_operands = 0 : i64, tpu.core_type = #tpu.core_type<tc>, window_params = [{transform_indices = @transform_0, window_bounds = array<i64: 256, 128>}, {pipeline_mode = #tpu.pipeline_mode<synchronous>, transform_indices = @transform_1, window_bounds = array<i64: 128, 128>}, {pipeline_mode = #tpu.pipeline_mode<synchronous>, transform_indices = @transform_2, window_bounds = array<i64: 1, 128>}, {transform_indices = @transform_3, window_bounds = array<i64: 256, 128>}]} {
    %c0 = arith.constant 0 : index
    %c0_0 = arith.constant 0 : index
    %0 = vector.load %arg1[%c0, %c0_0] : memref<256x128xf32, #tpu.memory_space<vmem>>, vector<256x128xf32>
    %c0_1 = arith.constant 0 : index
    %c0_2 = arith.constant 0 : index
    %1 = vector.load %arg2[%c0_1, %c0_2] : memref<128x128xf32, #tpu.memory_space<vmem>>, vector<128x128xf32>
    %cst = arith.constant dense<0.000000e+00> : vector<256x128xf32>
    %2 = tpu.matmul %0, %1, %cst {dimension_numbers = #tpu.dot_dimension_numbers<[1], [0], [0], [1], [0, 0, 1, 1], [], []>} : vector<256x128xf32>, vector<128x128xf32>, vector<256x128xf32> -> vector<256x128xf32>
    %c0_3 = arith.constant 0 : index
    %c0_4 = arith.constant 0 : index
    %3 = vector.load %arg3[%c0_3, %c0_4] : memref<1x128xf32, #tpu.memory_space<vmem>>, vector<1x128xf32>
    %4 = vector.broadcast %3 : vector<1x128xf32> to vector<256x128xf32>
    %5 = arith.addf %2, %4 : vector<256x128xf32>
    %c0_5 = arith.constant 0 : index
    %c0_6 = arith.constant 0 : index
    %6 = vector.load %arg4[%c0_5, %c0_6] : memref<256x128xf32, #tpu.memory_space<vmem>>, vector<256x128xf32>
    tpu.vector_store %arg4[%c0_5, %c0_6], %5 {strides = array<i32>} : memref<256x128xf32, #tpu.memory_space<vmem>>, vector<256x128xf32>,
    return
  }
  func.func @transform_0(%arg0: i32) -> (i32, i32) {
    %c0_i32 = arith.constant 0 : i32
    %c0_i32_0 = arith.constant 0 : i32
    return %arg0, %c0_i32 : i32, i32
  }
  func.func @transform_1(%arg0: i32) -> (i32, i32) {
    %c0_i32 = arith.constant 0 : i32
    %c0_i32_0 = arith.constant 0 : i32
    %c0_i32_1 = arith.constant 0 : i32
    return %c0_i32, %c0_i32_0 : i32, i32
  }
  func.func @transform_2(%arg0: i32) -> (i32, i32) {
    %c0_i32 = arith.constant 0 : i32
    %c0_i32_0 = arith.constant 0 : i32
    %c0_i32_1 = arith.constant 0 : i32
    return %c0_i32, %c0_i32_0 : i32, i32
  }
  func.func @transform_3(%arg0: i32) -> (i32, i32) {
    %c0_i32 = arith.constant 0 : i32
    %c0_i32_0 = arith.constant 0 : i32
    return %arg0, %c0_i32 : i32, i32
  }
}

</mosaic_0001>

<bundles_post_ra>
// kernel: tpu_custom_call.1
= control target key start
LH: loop header
LB: loop body
LE: loop exit
PB: predicated region body
PF: predicated region fallthrough
CT: control target
= control target key end

     0   :  { %8 = vsyncpa [#allocation3], 0  ;;  %s685_s0 = inlined_call_operand.hbm [shape: f32[256,128], index: 0, kind: input, shape index: {}]   ;;  %s686_s1 = inlined_call_operand.hbm [shape: f32[128,128], index: 1, kind: input, shape index: {}]   ;;  %s687_s2 = inlined_call_operand.vmem [shape: f32[1,128], index: 2, kind: input, shape index: {}]   ;;  %s688_s3 = inlined_call_operand.hbm [shape: f32[256,128], index: 3, kind: output, shape index: {}]  }
   0x1   :  { %9 = vsyncpa [#allocation6], 0 }
   0x2   :  { %10 = vsyncpa [#allocation4], 0  ;;  %s605_s12 = smov [#allocation2]  }
   0x3   :  { %s16_s13 = sshll.u32 %s605_s12, 4  ;;  %s17_s13 = int_to_ptr.vmem [resolvable:$true] %s16_s13 }
   0x4   :  { %s547_s14 = scalar_lea.vmem %s17_s13, 4096  ;;  %p552_p1 = scmp.lt.s32.totalorder %s17_s13, %s17_s13 }
   0x5   :  { %p548_p0 = scmp.ne.s32.totalorder %s17_s13, %s547_s14  ;;  %p553_p2 = scmp.lt.s32.totalorder %s547_s14, %s547_s14 }
   0x7   :  { %p554_p3 = por %p553_p2, %p552_p1 }
   0x9   :  { %p555_p4 = pnand %p554_p3, %p548_p0 }
   0xb   :  { %558 = shalt.err (!%p555_p4)
}
   0xc   :  { %s606_s15 = smov 128   ;;  %s607_s16 = smov 8  }
   0xd   :  { %22 = dma.hbm_to_vmem [thread:$0]  %s685_s0, 4096, %s17_s13, [#allocation3], %s606_s15, %s606_s15, %s607_s16  }
   0xe   :  { %s608_s19 = smov [#allocation5]  }
   0xf   :  { %s28_s20 = sshll.u32 %s608_s19, 4  ;;  %s29_s20 = int_to_ptr.vmem [resolvable:$true] %s28_s20 }
  0x10   :  { %s567_s21 = scalar_lea.vmem %s29_s20, 2048  ;;  %p572_p6 = scmp.lt.s32.totalorder %s29_s20, %s29_s20 }
  0x11   :  { %p568_p5 = scmp.ne.s32.totalorder %s29_s20, %s567_s21  ;;  %p573_p7 = scmp.lt.s32.totalorder %s567_s21, %s567_s21 }
  0x13   :  { %p574_p8 = por %p573_p7, %p572_p6 }
  0x15   :  { %p575_p9 = pnand %p574_p8, %p568_p5 }
  0x17   :  { %578 = shalt.err (!%p575_p9)
}
  0x18   :  { %34 = dma.hbm_to_vmem [thread:$0]  %s686_s1, 2048, %s29_s20, [#allocation6], %s606_s15, %s606_s15, %s607_s16  }
  0x19   :  { %599 = dma.done.wait [#allocation3], 4096  }
  0x1a   :  { %600 = vsyncadd [#allocation3], 4294963200 }
  0x1b   :  { %601 = dma.done.wait [#allocation6], 2048  }
  0x1c   :  { %602 = vsyncadd [#allocation6], 4294965248  ;;  %v90_v0 = vld [vmem:[#allocation5 + $0x78] sm:$0xff]  ;;  %v89_v1 = vld [vmem:[#allocation5 + $0x70] sm:$0xff] }
  0x1d   :  { %422 = vmatprep.subr.mxu0 %v90_v0  ;;  %502 = vmatprep.subr.mxu1 %v90_v0  ;;  %v88_v2 = vld [vmem:[#allocation5 + $0x68] sm:$0xff]  ;;  %v87_v3 = vld [vmem:[#allocation5 + $0x60] sm:$0xff]  ;;  %v86_v4 = vld [vmem:[#allocation5 + $0x58] sm:$0xff] }
  0x1e   :  { %423 = vmatpush3.msra.mxu0 %v90_v0  ;;  %518 = vmatpush3.msra.mxu1 %v90_v0  ;;  %v85_v5 = vld [vmem:[#allocation5 + $0x50] sm:$0xff]  ;;  %v84_v6 = vld [vmem:[#allocation5 + $0x48] sm:$0xff]  ;;  %v83_v7 = vld [vmem:[#allocation5 + $0x40] sm:$0xff] }
  0x1f   :  { %424 = vmatprep.subr.mxu0 %v89_v1  ;;  %503 = vmatprep.subr.mxu1 %v89_v1  ;;  %v82_v8 = vld [vmem:[#allocation5 + $0x38] sm:$0xff]  ;;  %v81_v9 = vld [vmem:[#allocation5 + $0x30] sm:$0xff]  ;;  %v80_v10 = vld [vmem:[#allocation5 + $0x28] sm:$0xff] }
  0x20   :  { %425 = vmatpush3.msra.mxu0 %v89_v1  ;;  %519 = vmatpush3.msra.mxu1 %v89_v1  ;;  %v79_v11 = vld [vmem:[#allocation5 + $0x20] sm:$0xff]  ;;  %v78_v12 = vld [vmem:[#allocation5 + $0x18] sm:$0xff]  ;;  %v77_v13 = vld [vmem:[#allocation5 + $0x10] sm:$0xff] }
  0x21   :  { %426 = vmatprep.subr.mxu0 %v88_v2  ;;  %504 = vmatprep.subr.mxu1 %v88_v2  ;;  %v76_v14 = vld [vmem:[#allocation5 + $0x8] sm:$0xff]  ;;  %v75_v15 = vld [vmem:[#allocation5] sm:$0xff]  ;;  %v45_v20 = vld [vmem:[#allocation2 + $0x10] sm:$0xff] }
  0x22   :  { %427 = vmatpush3.msra.mxu0 %v88_v2  ;;  %520 = vmatpush3.msra.mxu1 %v88_v2  ;;  %v43_v16 = vld [vmem:[#allocation2] sm:$0xff]  ;;  %v44_v18 = vld [vmem:[#allocation2 + $0x8] sm:$0xff]  ;;  %v61_v21 = vld [vmem:[#allocation2 + $0x90] sm:$0xff] }
  0x23   :  { %428 = vmatprep.subr.mxu0 %v87_v3  ;;  %505 = vmatprep.subr.mxu1 %v87_v3  ;;  %v59_v17 = vld [vmem:[#allocation2 + $0x80] sm:$0xff]  ;;  %v60_v19 = vld [vmem:[#allocation2 + $0x88] sm:$0xff]  ;;  %v46_v22 = vld [vmem:[#allocation2 + $0x18] sm:$0xff] }
  0x24   :  { %429 = vmatpush3.msra.mxu0 %v87_v3  ;;  %521 = vmatpush3.msra.mxu1 %v87_v3  ;;  %v62_v23 = vld [vmem:[#allocation2 + $0x98] sm:$0xff]  ;;  %v47_v24 = vld [vmem:[#allocation2 + $0x20] sm:$0xff]  ;;  %v48_v26 = vld [vmem:[#allocation2 + $0x28] sm:$0xff] }
  0x25   :  { %430 = vmatprep.subr.mxu0 %v86_v4  ;;  %506 = vmatprep.subr.mxu1 %v86_v4  ;;  %v63_v25 = vld [vmem:[#allocation2 + $0xa0] sm:$0xff]  ;;  %v64_v27 = vld [vmem:[#allocation2 + $0xa8] sm:$0xff]  ;;  %v49_v28 = vld [vmem:[#allocation2 + $0x30] sm:$0xff] }
  0x26   :  { %431 = vmatpush3.msra.mxu0 %v86_v4  ;;  %522 = vmatpush3.msra.mxu1 %v86_v4  ;;  %v65_v29 = vld [vmem:[#allocation2 + $0xb0] sm:$0xff]  ;;  %v50_v30 = vld [vmem:[#allocation2 + $0x38] sm:$0xff]  ;;  %v51_v32 = vld [vmem:[#allocation2 + $0x40] sm:$0xff] }
  0x27   :  { %432 = vmatprep.subr.mxu0 %v85_v5  ;;  %507 = vmatprep.subr.mxu1 %v85_v5  ;;  %v66_v31 = vld [vmem:[#allocation2 + $0xb8] sm:$0xff]  ;;  %v67_v33 = vld [vmem:[#allocation2 + $0xc0] sm:$0xff]  ;;  %v52_v34 = vld [vmem:[#allocation2 + $0x48] sm:$0xff] }
  0x28   :  { %433 = vmatpush3.msra.mxu0 %v85_v5  ;;  %523 = vmatpush3.msra.mxu1 %v85_v5  ;;  %v68_v35 = vld [vmem:[#allocation2 + $0xc8] sm:$0xff]  ;;  %v53_v36 = vld [vmem:[#allocation2 + $0x50] sm:$0xff]  ;;  %v54_v38 = vld [vmem:[#allocation2 + $0x58] sm:$0xff] }
  0x29   :  { %434 = vmatprep.subr.mxu0 %v84_v6  ;;  %508 = vmatprep.subr.mxu1 %v84_v6  ;;  %v69_v37 = vld [vmem:[#allocation2 + $0xd0] sm:$0xff]  ;;  %v70_v39 = vld [vmem:[#allocation2 + $0xd8] sm:$0xff]  ;;  %v55_v40 = vld [vmem:[#allocation2 + $0x60] sm:$0xff] }
  0x2a   :  { %435 = vmatpush3.msra.mxu0 %v84_v6  ;;  %524 = vmatpush3.msra.mxu1 %v84_v6  ;;  %v71_v41 = vld [vmem:[#allocation2 + $0xe0] sm:$0xff]  ;;  %v56_v42 = vld [vmem:[#allocation2 + $0x68] sm:$0xff]  ;;  %v57_v44 = vld [vmem:[#allocation2 + $0x70] sm:$0xff] }
  0x2b   :  { %436 = vmatprep.subr.mxu0 %v83_v7  ;;  %509 = vmatprep.subr.mxu1 %v83_v7  ;;  %v72_v43 = vld [vmem:[#allocation2 + $0xe8] sm:$0xff]  ;;  %v73_v45 = vld [vmem:[#allocation2 + $0xf0] sm:$0xff]  ;;  %v58_v46 = vld [vmem:[#allocation2 + $0x78] sm:$0xff] }
  0x2c   :  { %437 = vmatpush3.msra.mxu0 %v83_v7  ;;  %525 = vmatpush3.msra.mxu1 %v83_v7  ;;  %v74_v47 = vld [vmem:[#allocation2 + $0xf8] sm:$0xff]  ;;  %v645_v48 = vld [vmem:[%s687_s2] ss:$0 sm:$0xff]  ;;  %s609_s2 = smov [#allocation7]  }
  0x2d   :  { %438 = vmatprep.subr.mxu0 %v82_v8  ;;  %510 = vmatprep.subr.mxu1 %v82_v8  ;;  %s360_s24 = sshll.u32 %s609_s2, 4  ;;  %s361_s24 = int_to_ptr.vmem [resolvable:$true] %s360_s24 }
  0x2e   :  { %439 = vmatpush3.msra.mxu0 %v82_v8  ;;  %526 = vmatpush3.msra.mxu1 %v82_v8  ;;  %s579_s25 = scalar_lea.vmem %s361_s24, 4096  ;;  %p584_p11 = scmp.lt.s32.totalorder %s361_s24, %s361_s24 }
  0x2f   :  { %440 = vmatprep.subr.mxu0 %v81_v9  ;;  %511 = vmatprep.subr.mxu1 %v81_v9  ;;  %p580_p10 = scmp.ne.s32.totalorder %s361_s24, %s579_s25  ;;  %p585_p12 = scmp.lt.s32.totalorder %s579_s25, %s579_s25 }
  0x30   :  { %441 = vmatpush3.msra.mxu0 %v81_v9  ;;  %527 = vmatpush3.msra.mxu1 %v81_v9 }
  0x31   :  { %442 = vmatprep.subr.mxu0 %v80_v10  ;;  %512 = vmatprep.subr.mxu1 %v80_v10  ;;  %p586_p13 = por %p585_p12, %p584_p11 }
  0x32   :  { %443 = vmatpush3.msra.mxu0 %v80_v10  ;;  %528 = vmatpush3.msra.mxu1 %v80_v10 }
  0x33   :  { %444 = vmatprep.subr.mxu0 %v79_v11  ;;  %513 = vmatprep.subr.mxu1 %v79_v11  ;;  %p587_p0 = pnand %p586_p13, %p580_p10 }
  0x34   :  { %445 = vmatpush3.msra.mxu0 %v79_v11  ;;  %529 = vmatpush3.msra.mxu1 %v79_v11 }
  0x35   :  { %446 = vmatprep.subr.mxu0 %v78_v12  ;;  %514 = vmatprep.subr.mxu1 %v78_v12 }
  0x36   :  { %447 = vmatpush3.msra.mxu0 %v78_v12  ;;  %530 = vmatpush3.msra.mxu1 %v78_v12 }
  0x37   :  { %448 = vmatprep.subr.mxu0 %v77_v13  ;;  %515 = vmatprep.subr.mxu1 %v77_v13 }
  0x38   :  { %449 = vmatpush3.msra.mxu0 %v77_v13  ;;  %531 = vmatpush3.msra.mxu1 %v77_v13 }
  0x39   :  { %450 = vmatprep.subr.mxu0 %v76_v14  ;;  %516 = vmatprep.subr.mxu1 %v76_v14 }
  0x3a   :  { %451 = vmatpush3.msra.mxu0 %v76_v14  ;;  %532 = vmatpush3.msra.mxu1 %v76_v14 }
  0x3b   :  { %452 = vmatprep.subr.mxu0 %v75_v15  ;;  %517 = vmatprep.subr.mxu1 %v75_v15 }
  0x3c   :  { %453 = vmatpush3.msra.mxu0 %v75_v15  ;;  %533 = vmatpush3.msra.mxu1 %v75_v15 }
  0x3d   :  { %454 = vmatprep.mubr.f32.mxu0 %v43_v16  ;;  %478 = vmatprep.mubr.f32.mxu1 %v59_v17 }
  0x3e   :  { %455 = vmatmul.mubr.f32.vlgmr.msra.gmra.mxu0 %v44_v18  ;;  %479 = vmatmul.mubr.f32.vlgmr.msra.gmra.mxu1 %v60_v19 }
  0x3f   :  { %457 = vmatprep.mubr.f32.mxu0 %v45_v20  ;;  %481 = vmatprep.mubr.f32.mxu1 %v61_v21 }
  0x42   :  { %458 = vmatmul.mubr.f32.gmra.mxu0 %v46_v22  ;;  %482 = vmatmul.mubr.f32.gmra.mxu1 %v62_v23 }
  0x43   :  { %460 = vmatprep.mubr.f32.mxu0 %v47_v24  ;;  %484 = vmatprep.mubr.f32.mxu1 %v63_v25 }
  0x46   :  { %461 = vmatmul.mubr.f32.gmra.mxu0 %v48_v26  ;;  %485 = vmatmul.mubr.f32.gmra.mxu1 %v64_v27 }
  0x47   :  { %463 = vmatprep.mubr.f32.mxu0 %v49_v28  ;;  %487 = vmatprep.mubr.f32.mxu1 %v65_v29 }
  0x4a   :  { %464 = vmatmul.mubr.f32.gmra.mxu0 %v50_v30  ;;  %488 = vmatmul.mubr.f32.gmra.mxu1 %v66_v31 }
  0x4b   :  { %466 = vmatprep.mubr.f32.mxu0 %v51_v32  ;;  %490 = vmatprep.mubr.f32.mxu1 %v67_v33 }
  0x4e   :  { %467 = vmatmul.mubr.f32.gmra.mxu0 %v52_v34  ;;  %491 = vmatmul.mubr.f32.gmra.mxu1 %v68_v35 }
  0x4f   :  { %469 = vmatprep.mubr.f32.mxu0 %v53_v36  ;;  %493 = vmatprep.mubr.f32.mxu1 %v69_v37 }
  0x52   :  { %470 = vmatmul.mubr.f32.gmra.mxu0 %v54_v38  ;;  %494 = vmatmul.mubr.f32.gmra.mxu1 %v70_v39 }
  0x53   :  { %472 = vmatprep.mubr.f32.mxu0 %v55_v40  ;;  %496 = vmatprep.mubr.f32.mxu1 %v71_v41 }
  0x56   :  { %473 = vmatmul.mubr.f32.gmra.mxu0 %v56_v42  ;;  %497 = vmatmul.mubr.f32.gmra.mxu1 %v72_v43 }
  0x57   :  { %475 = vmatprep.mubr.f32.mxu0 %v57_v44  ;;  %499 = vmatprep.mubr.f32.mxu1 %v73_v45 }
  0x5a   :  { %476 = vmatmul.mubr.f32.gmra.mxu0 %v58_v46  ;;  %500 = vmatmul.mubr.f32.gmra.mxu1 %v74_v47 }
  0xfe   :  { %v456_v49 = vpop.f32.mrf.mxu0  ;;  %v480_v50 = vpop.f32.mrf.mxu1 }
  0xff   :  { %v170_v51 = vadd.f32 %v456_v49, %v645_v48  ;;  %v250_v52 = vadd.f32 %v480_v50, %v645_v48 }
 0x100   :  { %v164_v53 = vpop.f32.mrf.mxu0  ;;  %v244_v54 = vpop.f32.mrf.mxu1 }
 0x101   :  { %324 = vst [vmem:[#allocation7 + $0x8] sm:$0xff] %v170_v51  ;;  %340 = vst [vmem:[#allocation7 + $0x88] sm:$0xff] %v250_v52  ;;  %v165_v55 = vadd.f32 %v645_v48, %v164_v53  ;;  %v245_v56 = vadd.f32 %v645_v48, %v244_v54 }
 0x102   :  { %v459_v57 = vpop.f32.mrf.mxu0  ;;  %v483_v58 = vpop.f32.mrf.mxu1 }
 0x103   :  { %323 = vst [vmem:[#allocation7] sm:$0xff] %v165_v55  ;;  %339 = vst [vmem:[#allocation7 + $0x80] sm:$0xff] %v245_v56  ;;  %v180_v59 = vadd.f32 %v459_v57, %v645_v48  ;;  %v260_v60 = vadd.f32 %v483_v58, %v645_v48 }
 0x104   :  { %v174_v61 = vpop.f32.mrf.mxu0  ;;  %v254_v62 = vpop.f32.mrf.mxu1 }
 0x105   :  { %326 = vst [vmem:[#allocation7 + $0x18] sm:$0xff] %v180_v59  ;;  %342 = vst [vmem:[#allocation7 + $0x98] sm:$0xff] %v260_v60  ;;  %v175_v63 = vadd.f32 %v645_v48, %v174_v61  ;;  %v255_v0 = vadd.f32 %v645_v48, %v254_v62 }
 0x106   :  { %v462_v1 = vpop.f32.mrf.mxu0  ;;  %v486_v2 = vpop.f32.mrf.mxu1 }
 0x107   :  { %325 = vst [vmem:[#allocation7 + $0x10] sm:$0xff] %v175_v63  ;;  %341 = vst [vmem:[#allocation7 + $0x90] sm:$0xff] %v255_v0  ;;  %v190_v3 = vadd.f32 %v462_v1, %v645_v48  ;;  %v270_v4 = vadd.f32 %v486_v2, %v645_v48 }
 0x108   :  { %v184_v5 = vpop.f32.mrf.mxu0  ;;  %v264_v6 = vpop.f32.mrf.mxu1 }
 0x109   :  { %328 = vst [vmem:[#allocation7 + $0x28] sm:$0xff] %v190_v3  ;;  %344 = vst [vmem:[#allocation7 + $0xa8] sm:$0xff] %v270_v4  ;;  %v185_v7 = vadd.f32 %v645_v48, %v184_v5  ;;  %v265_v8 = vadd.f32 %v645_v48, %v264_v6 }
 0x10a   :  { %v465_v9 = vpop.f32.mrf.mxu0  ;;  %v489_v10 = vpop.f32.mrf.mxu1 }
 0x10b   :  { %327 = vst [vmem:[#allocation7 + $0x20] sm:$0xff] %v185_v7  ;;  %343 = vst [vmem:[#allocation7 + $0xa0] sm:$0xff] %v265_v8  ;;  %v200_v11 = vadd.f32 %v465_v9, %v645_v48  ;;  %v280_v12 = vadd.f32 %v489_v10, %v645_v48 }
 0x10c   :  { %v194_v13 = vpop.f32.mrf.mxu0  ;;  %v274_v14 = vpop.f32.mrf.mxu1 }
 0x10d   :  { %330 = vst [vmem:[#allocation7 + $0x38] sm:$0xff] %v200_v11  ;;  %346 = vst [vmem:[#allocation7 + $0xb8] sm:$0xff] %v280_v12  ;;  %v195_v15 = vadd.f32 %v645_v48, %v194_v13  ;;  %v275_v16 = vadd.f32 %v645_v48, %v274_v14 }
 0x10e   :  { %v468_v17 = vpop.f32.mrf.mxu0  ;;  %v492_v18 = vpop.f32.mrf.mxu1 }
 0x10f   :  { %329 = vst [vmem:[#allocation7 + $0x30] sm:$0xff] %v195_v15  ;;  %345 = vst [vmem:[#allocation7 + $0xb0] sm:$0xff] %v275_v16  ;;  %v210_v19 = vadd.f32 %v468_v17, %v645_v48  ;;  %v290_v20 = vadd.f32 %v492_v18, %v645_v48 }
 0x110   :  { %v204_v21 = vpop.f32.mrf.mxu0  ;;  %v284_v22 = vpop.f32.mrf.mxu1 }
 0x111   :  { %332 = vst [vmem:[#allocation7 + $0x48] sm:$0xff] %v210_v19  ;;  %348 = vst [vmem:[#allocation7 + $0xc8] sm:$0xff] %v290_v20  ;;  %v205_v23 = vadd.f32 %v645_v48, %v204_v21  ;;  %v285_v24 = vadd.f32 %v645_v48, %v284_v22 }
 0x112   :  { %v471_v25 = vpop.f32.mrf.mxu0  ;;  %v495_v26 = vpop.f32.mrf.mxu1 }
 0x113   :  { %331 = vst [vmem:[#allocation7 + $0x40] sm:$0xff] %v205_v23  ;;  %347 = vst [vmem:[#allocation7 + $0xc0] sm:$0xff] %v285_v24  ;;  %v220_v27 = vadd.f32 %v471_v25, %v645_v48  ;;  %v300_v28 = vadd.f32 %v495_v26, %v645_v48 }
 0x114   :  { %v214_v29 = vpop.f32.mrf.mxu0  ;;  %v294_v30 = vpop.f32.mrf.mxu1 }
 0x115   :  { %334 = vst [vmem:[#allocation7 + $0x58] sm:$0xff] %v220_v27  ;;  %350 = vst [vmem:[#allocation7 + $0xd8] sm:$0xff] %v300_v28  ;;  %v215_v31 = vadd.f32 %v645_v48, %v214_v29  ;;  %v295_v32 = vadd.f32 %v645_v48, %v294_v30 }
 0x116   :  { %v474_v33 = vpop.f32.mrf.mxu0  ;;  %v498_v34 = vpop.f32.mrf.mxu1 }
 0x117   :  { %333 = vst [vmem:[#allocation7 + $0x50] sm:$0xff] %v215_v31  ;;  %349 = vst [vmem:[#allocation7 + $0xd0] sm:$0xff] %v295_v32  ;;  %v230_v35 = vadd.f32 %v474_v33, %v645_v48  ;;  %v310_v36 = vadd.f32 %v498_v34, %v645_v48 }
 0x118   :  { %v224_v37 = vpop.f32.mrf.mxu0  ;;  %v304_v38 = vpop.f32.mrf.mxu1 }
 0x119   :  { %336 = vst [vmem:[#allocation7 + $0x68] sm:$0xff] %v230_v35  ;;  %352 = vst [vmem:[#allocation7 + $0xe8] sm:$0xff] %v310_v36  ;;  %v225_v39 = vadd.f32 %v645_v48, %v224_v37  ;;  %v305_v40 = vadd.f32 %v645_v48, %v304_v38 }
 0x11a   :  { %v477_v41 = vpop.f32.mrf.mxu0  ;;  %v501_v42 = vpop.f32.mrf.mxu1 }
 0x11b   :  { %335 = vst [vmem:[#allocation7 + $0x60] sm:$0xff] %v225_v39  ;;  %351 = vst [vmem:[#allocation7 + $0xe0] sm:$0xff] %v305_v40  ;;  %v240_v43 = vadd.f32 %v477_v41, %v645_v48  ;;  %v320_v44 = vadd.f32 %v501_v42, %v645_v48 }
 0x11c   :  { %v234_v45 = vpop.f32.mrf.mxu0  ;;  %v314_v46 = vpop.f32.mrf.mxu1 }
 0x11d   :  { %338 = vst [vmem:[#allocation7 + $0x78] sm:$0xff] %v240_v43  ;;  %354 = vst [vmem:[#allocation7 + $0xf8] sm:$0xff] %v320_v44  ;;  %v235_v47 = vadd.f32 %v645_v48, %v234_v45  ;;  %v315_v49 = vadd.f32 %v645_v48, %v314_v46 }
 0x11f   :  { %337 = vst [vmem:[#allocation7 + $0x70] sm:$0xff] %v235_v47  ;;  %353 = vst [vmem:[#allocation7 + $0xf0] sm:$0xff] %v315_v49 }
 0x120   :  { %590 = shalt.err (!%p587_p0)
}
 0x121   :  { %366 = dma.vmem_to_hbm [thread:$0]  %s361_s24, 4096, %s688_s3, [#allocation4], %s606_s15, %s606_s15, %s607_s16  }
 0x122   :  { %603 = dma.done.wait [#allocation4], 4096  }
 0x123   :  { %604 = vsyncadd [#allocation4], 4294963200 }
 0x124   :  { %370 = vsyncpa [#allocation3], 1 }
 0x125   :  { %371 = vsyncpa [#allocation6], 1 }
 0x126   :  { %372 = vsyncpa [#allocation4], 1 }

</bundles_post_ra>
